<compile_context>
chip_gen: v6e
topology: v6e:2x2x1
jax: 0.10.0
libtpu: 0.0.40
codegen_flags: <defaults>
</compile_context>

<pallas_src>
import math
import functools

import jax
import jax.numpy as jnp
from jax import lax
from jax.experimental import pallas as pl
from jax.experimental.pallas import tpu as pltpu


def _msa_kernel(x_ref, wqkv_ref, bqkv_ref, wo_ref, bo_ref, o_ref,
                q_scr, k_scr, v_scr, ctx_scr,
                *, n_heads, head_dim, q_tile, kv_tile):
    H, D, tq, tk = n_heads, head_dim, q_tile, kv_tile
    E = H * D
    S = x_ref.shape[1]
    nq = S // tq
    nk = S // tk
    qi = pl.program_id(1)

    # ---- Fused QKV projection, once per batch element (qi == 0). ----------
    # Single (S, E) @ (E, 3E) matmul, bf16 operands, f32 accumulation.
    # The 1/sqrt(D) scale is pre-folded into the Q columns of wqkv / bqkv.
    @pl.when(qi == 0)
    def _():
        x = x_ref[0].astype(jnp.bfloat16)                      # (S, E)
        qkv = jnp.dot(x, wqkv_ref[...],
                      preferred_element_type=jnp.float32)      # (S, 3E) f32
        qkv = (qkv + bqkv_ref[...]).astype(jnp.bfloat16)
        # Head-major scratch layout (H, S, D); static per-head lane slices,
        # done once per batch element and amortized over all query tiles.
        for h in range(H):
            q_scr[h] = qkv[:, h * D:(h + 1) * D]
            k_scr[h] = qkv[:, E + h * D:E + (h + 1) * D]
            v_scr[h] = qkv[:, 2 * E + h * D:2 * E + (h + 1) * D]

    # ---- Flash-style attention for this query tile. -------------------------
    if nq == 1:
        q = q_scr[...]                                         # (H, S, D)
    else:
        q_off = pl.multiple_of(qi * tq, tq)
        q = q_scr[:, pl.ds(q_off, tq), :]                      # (H, tq, D)

    def kv_step(ki, carry):
        m, l, acc = carry
        if nk == 1:
            k_blk = k_scr[...]
            v_blk = v_scr[...]
        else:
            k_off = pl.multiple_of(ki * tk, tk)
            k_blk = k_scr[:, pl.ds(k_off, tk), :]              # (H, tk, D)
            v_blk = v_scr[:, pl.ds(k_off, tk), :]
        # Batched-over-heads QK^T: (H, tq, D) x (H, tk, D) -> (H, tq, tk)
        s = lax.dot_general(q, k_blk, (((2,), (2,)), ((0,), (0,))),
                            preferred_element_type=jnp.float32)
        m_new = jnp.maximum(m, jnp.max(s, axis=-1, keepdims=True))
        alpha = jnp.exp(m - m_new)
        p = jnp.exp(s - m_new)
        l_new = alpha * l + jnp.sum(p, axis=-1, keepdims=True)
        # Batched-over-heads PV: (H, tq, tk) x (H, tk, D) -> (H, tq, D)
        pv = lax.dot_general(p.astype(jnp.bfloat16), v_blk,
                             (((2,), (1,)), ((0,), (0,))),
                             preferred_element_type=jnp.float32)
        return m_new, l_new, alpha * acc + pv

    m0 = jnp.full((H, tq, 1), -jnp.inf, dtype=jnp.float32)
    l0 = jnp.zeros((H, tq, 1), dtype=jnp.float32)
    a0 = jnp.zeros((H, tq, D), dtype=jnp.float32)
    m, l, acc = lax.fori_loop(0, nk, kv_step, (m0, l0, a0), unroll=(nk <= 8))

    ctx = acc * pl.reciprocal(l, approx=True)                  # (H, tq, D) f32
    # Write heads back into a lane-contiguous (tq, E) buffer (no concatenate).
    for h in range(H):
        ctx_scr[:, h * D:(h + 1) * D] = ctx[h].astype(jnp.bfloat16)

    # ---- Output projection. --------------------------------------------------
    y = jnp.dot(ctx_scr[...], wo_ref[...],
                preferred_element_type=jnp.float32) + bo_ref[...]
    o_ref[0] = y.astype(o_ref.dtype)


def msa_forward(x, params, *, n_heads, q_tile=128, kv_tile=128):
    """x: (B, S, E) float32. params: wq,bq,wk,bk,wv,bv,wo,bo with (in, out) weights."""
    B, S, E = x.shape
    assert E % n_heads == 0
    D = E // n_heads

    tq = S if S <= q_tile else q_tile
    tk = S if S <= kv_tile else kv_tile
    assert S % tq == 0 and S % tk == 0, "seq_len must be divisible by tile sizes"
    # Dynamic sublane slices of bf16 scratch must stay 16-row aligned.
    assert tq == S or tq % 16 == 0
    assert tk == S or tk % 16 == 0

    scale = 1.0 / math.sqrt(D)
    # Fused QKV weight (E, 3E); 1/sqrt(D) folded into the Q columns (one-time).
    wqkv = jnp.concatenate(
        [params["wq"] * scale, params["wk"], params["wv"]], axis=1
    ).astype(jnp.bfloat16)
    bqkv = jnp.concatenate(
        [params["bq"] * scale, params["bk"], params["bv"]], axis=0
    ).reshape(1, 3 * E).astype(jnp.float32)
    wo = params["wo"].astype(jnp.bfloat16)
    bo = params["bo"].reshape(1, E).astype(jnp.float32)

    kernel = functools.partial(_msa_kernel, n_heads=n_heads, head_dim=D,
                               q_tile=tq, kv_tile=tk)

    # Grid-invariant weights/biases: whole-array single-copy VMEM residents
    # (no pipelining, no double buffering).
    def wspec():
        return pl.BlockSpec(memory_space=pltpu.MemorySpace.VMEM)

    grid = (B, S // tq)
    return pl.pallas_call(
        kernel,
        out_shape=jax.ShapeDtypeStruct((B, S, E), x.dtype),
        grid_spec=pltpu.PrefetchScalarGridSpec(
            num_scalar_prefetch=0,
            grid=grid,
            in_specs=[
                pl.BlockSpec((1, S, E), lambda b, q: (b, 0, 0)),  # x, once per batch
                wspec(),   # wqkv (E, 3E) bf16
                wspec(),   # bqkv (1, 3E) f32
                wspec(),   # wo   (E, E)  bf16
                wspec(),   # bo   (1, E)  f32
            ],
            out_specs=pl.BlockSpec((1, tq, E), lambda b, q: (b, q, 0)),
            scratch_shapes=[
                pltpu.VMEM((n_heads, S, D), jnp.bfloat16),   # Q (full seq)
                pltpu.VMEM((n_heads, S, D), jnp.bfloat16),   # K
                pltpu.VMEM((n_heads, S, D), jnp.bfloat16),   # V
                pltpu.VMEM((tq, E), jnp.bfloat16),           # ctx (heads merged)
            ],
        ),
        compiler_params=pltpu.CompilerParams(
            # Batch axis shards across TensorCores (v7x megacore); the q-tile
            # axis carries the per-batch Q/K/V scratch -> keep it sequential.
            dimension_semantics=("parallel", "arbitrary"),
            vmem_limit_bytes=64 * 1024 * 1024,
        ),
    )(x, wqkv, bqkv, wo, bo)


def init_msa_params(key, emb_dim):
    """Deterministic init mimicking nn.Linear default (uniform +/- 1/sqrt(fan_in))."""
    bound = 1.0 / math.sqrt(emb_dim)
    keys = jax.random.split(key, 8)

    def lin(kw, kb):
        w = jax.random.uniform(kw, (emb_dim, emb_dim), jnp.float32, -bound, bound)
        b = jax.random.uniform(kb, (emb_dim,), jnp.float32, -bound, bound)
        return w, b

    wq, bq = lin(keys[0], keys[1])
    wk, bk = lin(keys[2], keys[3])
    wv, bv = lin(keys[4], keys[5])
    wo, bo = lin(keys[6], keys[7])
    return dict(wq=wq, bq=bq, wk=wk, bk=bk, wv=wv, bv=bv, wo=wo, bo=bo)


def msa_reference(x, params, *, n_heads):
    """Pure-JAX f32 reference matching the PyTorch forward."""
    B, S, E = x.shape
    D = E // n_heads

    def lin(t, w, b):
        return t @ w + b

    q = lin(x, params["wq"], params["bq"]).reshape(B, S, n_heads, D).transpose(0, 2, 1, 3)
    k = lin(x, params["wk"], params["bk"]).reshape(B, S, n_heads, D).transpose(0, 2, 1, 3)
    v = lin(x, params["wv"], params["bv"]).reshape(B, S, n_heads, D).transpose(0, 2, 1, 3)
    attn = jax.nn.softmax(q @ jnp.swapaxes(k, -2, -1) / math.sqrt(D), axis=-1)
    ctx = (attn @ v).transpose(0, 2, 1, 3).reshape(B, S, E)
    return lin(ctx, params["wo"], params["bo"])


if __name__ == "__main__":
    def _check(B, S, E, H, q_tile, kv_tile, key):
        kx, kp = jax.random.split(key)
        x = jax.random.normal(kx, (B, S, E), jnp.float32)
        params = init_msa_params(kp, E)
        out = jax.block_until_ready(
            msa_forward(x, params, n_heads=H, q_tile=q_tile, kv_tile=kv_tile))
        ref = msa_reference(x, params, n_heads=H)
        assert out.shape == (B, S, E)
        err = float(jnp.max(jnp.abs(out - ref)))
        # bf16 MXU operands with f32 accumulation -> loosened tolerance.
        assert err < 5e-2, f"max abs err {err}"

    root = jax.random.PRNGKey(0)
    k1, k2 = jax.random.split(root)
    # Single q/kv tile path (small module-like shapes).
    _check(2, 8, 32, 4, 128, 128, k1)
    # Multi q-tile + multi kv-tile (flash/online-softmax) path.
    _check(2, 32, 32, 4, 16, 16, k2)
    print("KERNEL_OK")
</pallas_src>

<mosaic_0001>
module attributes {stable_mosaic.version = 11 : i64} {
  func.func @_msa_kernel(%arg0: i32, %arg1: i32, %arg2: memref<1x8x32xf32, #tpu.memory_space<vmem>>, %arg3: memref<32x96xbf16, #tpu.memory_space<vmem>>, %arg4: memref<1x96xf32, #tpu.memory_space<vmem>>, %arg5: memref<32x32xbf16, #tpu.memory_space<vmem>>, %arg6: memref<1x32xf32, #tpu.memory_space<vmem>>, %arg7: memref<1x8x32xf32, #tpu.memory_space<vmem>>, %arg8: memref<4x8x8xbf16, #tpu.memory_space<vmem>>, %arg9: memref<4x8x8xbf16, #tpu.memory_space<vmem>>, %arg10: memref<4x8x8xbf16, #tpu.memory_space<vmem>>, %arg11: memref<8x32xbf16, #tpu.memory_space<vmem>>) attributes {dimension_semantics = [#tpu.dimension_semantics<parallel>, #tpu.dimension_semantics<arbitrary>], iteration_bounds = array<i64: 2, 1>, scalar_prefetch = 0 : i64, scratch_operands = 4 : i64, tpu.core_type = #tpu.core_type<tc>, window_params = [{transform_indices = @transform_0, window_bounds = array<i64: 1, 8, 32>}, {pipeline_mode = #tpu.pipeline_mode<synchronous>, transform_indices = @transform_1, window_bounds = array<i64: 32, 96>}, {pipeline_mode = #tpu.pipeline_mode<synchronous>, transform_indices = @transform_2, window_bounds = array<i64: 1, 96>}, {pipeline_mode = #tpu.pipeline_mode<synchronous>, transform_indices = @transform_3, window_bounds = array<i64: 32, 32>}, {pipeline_mode = #tpu.pipeline_mode<synchronous>, transform_indices = @transform_4, window_bounds = array<i64: 1, 32>}, {transform_indices = @transform_5, window_bounds = array<i64: 1, 8, 32>}]} {
    %c0_i32 = arith.constant 0 : i32
    %0 = arith.cmpi eq, %arg1, %c0_i32 : i32
    %1 = arith.extui %0 : i1 to i32
    %c0_i32_0 = arith.constant 0 : i32
    %2 = arith.cmpi ne, %1, %c0_i32_0 : i32
    scf.if %2 {
      %c0_31 = arith.constant 0 : index
      %c0_32 = arith.constant 0 : index
      %c0_33 = arith.constant 0 : index
      %55 = vector.load %arg2[%c0_31, %c0_32, %c0_33] : memref<1x8x32xf32, #tpu.memory_space<vmem>>, vector<1x8x32xf32>
      %56 = vector.shape_cast %55 : vector<1x8x32xf32> to vector<8x32xf32>
      %57 = arith.truncf %56 : vector<8x32xf32> to vector<8x32xbf16>
      %c0_34 = arith.constant 0 : index
      %c0_35 = arith.constant 0 : index
      %58 = vector.load %arg3[%c0_34, %c0_35] : memref<32x96xbf16, #tpu.memory_space<vmem>>, vector<32x96xbf16>
      %cst_36 = arith.constant dense<0.000000e+00> : vector<8x96xf32>
      %59 = tpu.matmul %57, %58, %cst_36 {dimension_numbers = #tpu.dot_dimension_numbers<[1], [0], [0], [1], [0, 0, 1, 1], [], []>} : vector<8x32xbf16>, vector<32x96xbf16>, vector<8x96xf32> -> vector<8x96xf32>
      %c0_37 = arith.constant 0 : index
      %c0_38 = arith.constant 0 : index
      %60 = vector.load %arg4[%c0_37, %c0_38] : memref<1x96xf32, #tpu.memory_space<vmem>>, vector<1x96xf32>
      %61 = vector.broadcast %60 : vector<1x96xf32> to vector<8x96xf32>
      %62 = arith.addf %59, %61 : vector<8x96xf32>
      %63 = arith.truncf %62 : vector<8x96xf32> to vector<8x96xbf16>
      %64 = vector.extract_strided_slice %63 {offsets = [0, 0], sizes = [8, 8], strides = [1, 1]} : vector<8x96xbf16> to vector<8x8xbf16>
      %c0_39 = arith.constant 0 : index
      %c0_40 = arith.constant 0 : index
      %c0_41 = arith.constant 0 : index
      %65 = vector.load %arg8[%c0_39, %c0_40, %c0_41] : memref<4x8x8xbf16, #tpu.memory_space<vmem>>, vector<1x8x8xbf16>
      %66 = vector.shape_cast %65 : vector<1x8x8xbf16> to vector<8x8xbf16>
      %67 = vector.shape_cast %64 : vector<8x8xbf16> to vector<1x8x8xbf16>
      tpu.vector_store %arg8[%c0_39, %c0_40, %c0_41], %67 {strides = array<i32>} : memref<4x8x8xbf16, #tpu.memory_space<vmem>>, vector<1x8x8xbf16>,
      %68 = vector.extract_strided_slice %63 {offsets = [0, 32], sizes = [8, 8], strides = [1, 1]} : vector<8x96xbf16> to vector<8x8xbf16>
      %c0_42 = arith.constant 0 : index
      %c0_43 = arith.constant 0 : index
      %c0_44 = arith.constant 0 : index
      %69 = vector.load %arg9[%c0_42, %c0_43, %c0_44] : memref<4x8x8xbf16, #tpu.memory_space<vmem>>, vector<1x8x8xbf16>
      %70 = vector.shape_cast %69 : vector<1x8x8xbf16> to vector<8x8xbf16>
      %71 = vector.shape_cast %68 : vector<8x8xbf16> to vector<1x8x8xbf16>
      tpu.vector_store %arg9[%c0_42, %c0_43, %c0_44], %71 {strides = array<i32>} : memref<4x8x8xbf16, #tpu.memory_space<vmem>>, vector<1x8x8xbf16>,
      %72 = vector.extract_strided_slice %63 {offsets = [0, 64], sizes = [8, 8], strides = [1, 1]} : vector<8x96xbf16> to vector<8x8xbf16>
      %c0_45 = arith.constant 0 : index
      %c0_46 = arith.constant 0 : index
      %c0_47 = arith.constant 0 : index
      %73 = vector.load %arg10[%c0_45, %c0_46, %c0_47] : memref<4x8x8xbf16, #tpu.memory_space<vmem>>, vector<1x8x8xbf16>
      %74 = vector.shape_cast %73 : vector<1x8x8xbf16> to vector<8x8xbf16>
      %75 = vector.shape_cast %72 : vector<8x8xbf16> to vector<1x8x8xbf16>
      tpu.vector_store %arg10[%c0_45, %c0_46, %c0_47], %75 {strides = array<i32>} : memref<4x8x8xbf16, #tpu.memory_space<vmem>>, vector<1x8x8xbf16>,
      %76 = vector.extract_strided_slice %63 {offsets = [0, 8], sizes = [8, 8], strides = [1, 1]} : vector<8x96xbf16> to vector<8x8xbf16>
      %c1 = arith.constant 1 : index
      %c0_48 = arith.constant 0 : index
      %c0_49 = arith.constant 0 : index
      %77 = vector.load %arg8[%c1, %c0_48, %c0_49] : memref<4x8x8xbf16, #tpu.memory_space<vmem>>, vector<1x8x8xbf16>
      %78 = vector.shape_cast %77 : vector<1x8x8xbf16> to vector<8x8xbf16>
      %79 = vector.shape_cast %76 : vector<8x8xbf16> to vector<1x8x8xbf16>
      tpu.vector_store %arg8[%c1, %c0_48, %c0_49], %79 {strides = array<i32>} : memref<4x8x8xbf16, #tpu.memory_space<vmem>>, vector<1x8x8xbf16>,
      %80 = vector.extract_strided_slice %63 {offsets = [0, 40], sizes = [8, 8], strides = [1, 1]} : vector<8x96xbf16> to vector<8x8xbf16>
      %c1_50 = arith.constant 1 : index
      %c0_51 = arith.constant 0 : index
      %c0_52 = arith.constant 0 : index
      %81 = vector.load %arg9[%c1_50, %c0_51, %c0_52] : memref<4x8x8xbf16, #tpu.memory_space<vmem>>, vector<1x8x8xbf16>
      %82 = vector.shape_cast %81 : vector<1x8x8xbf16> to vector<8x8xbf16>
      %83 = vector.shape_cast %80 : vector<8x8xbf16> to vector<1x8x8xbf16>
      tpu.vector_store %arg9[%c1_50, %c0_51, %c0_52], %83 {strides = array<i32>} : memref<4x8x8xbf16, #tpu.memory_space<vmem>>, vector<1x8x8xbf16>,
      %84 = vector.extract_strided_slice %63 {offsets = [0, 72], sizes = [8, 8], strides = [1, 1]} : vector<8x96xbf16> to vector<8x8xbf16>
      %c1_53 = arith.constant 1 : index
      %c0_54 = arith.constant 0 : index
      %c0_55 = arith.constant 0 : index
      %85 = vector.load %arg10[%c1_53, %c0_54, %c0_55] : memref<4x8x8xbf16, #tpu.memory_space<vmem>>, vector<1x8x8xbf16>
      %86 = vector.shape_cast %85 : vector<1x8x8xbf16> to vector<8x8xbf16>
      %87 = vector.shape_cast %84 : vector<8x8xbf16> to vector<1x8x8xbf16>
      tpu.vector_store %arg10[%c1_53, %c0_54, %c0_55], %87 {strides = array<i32>} : memref<4x8x8xbf16, #tpu.memory_space<vmem>>, vector<1x8x8xbf16>,
      %88 = vector.extract_strided_slice %63 {offsets = [0, 16], sizes = [8, 8], strides = [1, 1]} : vector<8x96xbf16> to vector<8x8xbf16>
      %c2 = arith.constant 2 : index
      %c0_56 = arith.constant 0 : index
      %c0_57 = arith.constant 0 : index
      %89 = vector.load %arg8[%c2, %c0_56, %c0_57] : memref<4x8x8xbf16, #tpu.memory_space<vmem>>, vector<1x8x8xbf16>
      %90 = vector.shape_cast %89 : vector<1x8x8xbf16> to vector<8x8xbf16>
      %91 = vector.shape_cast %88 : vector<8x8xbf16> to vector<1x8x8xbf16>
      tpu.vector_store %arg8[%c2, %c0_56, %c0_57], %91 {strides = array<i32>} : memref<4x8x8xbf16, #tpu.memory_space<vmem>>, vector<1x8x8xbf16>,
      %92 = vector.extract_strided_slice %63 {offsets = [0, 48], sizes = [8, 8], strides = [1, 1]} : vector<8x96xbf16> to vector<8x8xbf16>
      %c2_58 = arith.constant 2 : index
      %c0_59 = arith.constant 0 : index
      %c0_60 = arith.constant 0 : index
      %93 = vector.load %arg9[%c2_58, %c0_59, %c0_60] : memref<4x8x8xbf16, #tpu.memory_space<vmem>>, vector<1x8x8xbf16>
      %94 = vector.shape_cast %93 : vector<1x8x8xbf16> to vector<8x8xbf16>
      %95 = vector.shape_cast %92 : vector<8x8xbf16> to vector<1x8x8xbf16>
      tpu.vector_store %arg9[%c2_58, %c0_59, %c0_60], %95 {strides = array<i32>} : memref<4x8x8xbf16, #tpu.memory_space<vmem>>, vector<1x8x8xbf16>,
      %96 = vector.extract_strided_slice %63 {offsets = [0, 80], sizes = [8, 8], strides = [1, 1]} : vector<8x96xbf16> to vector<8x8xbf16>
      %c2_61 = arith.constant 2 : index
      %c0_62 = arith.constant 0 : index
      %c0_63 = arith.constant 0 : index
      %97 = vector.load %arg10[%c2_61, %c0_62, %c0_63] : memref<4x8x8xbf16, #tpu.memory_space<vmem>>, vector<1x8x8xbf16>
      %98 = vector.shape_cast %97 : vector<1x8x8xbf16> to vector<8x8xbf16>
      %99 = vector.shape_cast %96 : vector<8x8xbf16> to vector<1x8x8xbf16>
      tpu.vector_store %arg10[%c2_61, %c0_62, %c0_63], %99 {strides = array<i32>} : memref<4x8x8xbf16, #tpu.memory_space<vmem>>, vector<1x8x8xbf16>,
      %100 = vector.extract_strided_slice %63 {offsets = [0, 24], sizes = [8, 8], strides = [1, 1]} : vector<8x96xbf16> to vector<8x8xbf16>
      %c3 = arith.constant 3 : index
      %c0_64 = arith.constant 0 : index
      %c0_65 = arith.constant 0 : index
      %101 = vector.load %arg8[%c3, %c0_64, %c0_65] : memref<4x8x8xbf16, #tpu.memory_space<vmem>>, vector<1x8x8xbf16>
      %102 = vector.shape_cast %101 : vector<1x8x8xbf16> to vector<8x8xbf16>
      %103 = vector.shape_cast %100 : vector<8x8xbf16> to vector<1x8x8xbf16>
      tpu.vector_store %arg8[%c3, %c0_64, %c0_65], %103 {strides = array<i32>} : memref<4x8x8xbf16, #tpu.memory_space<vmem>>, vector<1x8x8xbf16>,
      %104 = vector.extract_strided_slice %63 {offsets = [0, 56], sizes = [8, 8], strides = [1, 1]} : vector<8x96xbf16> to vector<8x8xbf16>
      %c3_66 = arith.constant 3 : index
      %c0_67 = arith.constant 0 : index
      %c0_68 = arith.constant 0 : index
      %105 = vector.load %arg9[%c3_66, %c0_67, %c0_68] : memref<4x8x8xbf16, #tpu.memory_space<vmem>>, vector<1x8x8xbf16>
      %106 = vector.shape_cast %105 : vector<1x8x8xbf16> to vector<8x8xbf16>
      %107 = vector.shape_cast %104 : vector<8x8xbf16> to vector<1x8x8xbf16>
      tpu.vector_store %arg9[%c3_66, %c0_67, %c0_68], %107 {strides = array<i32>} : memref<4x8x8xbf16, #tpu.memory_space<vmem>>, vector<1x8x8xbf16>,
      %108 = vector.extract_strided_slice %63 {offsets = [0, 88], sizes = [8, 8], strides = [1, 1]} : vector<8x96xbf16> to vector<8x8xbf16>
      %c3_69 = arith.constant 3 : index
      %c0_70 = arith.constant 0 : index
      %c0_71 = arith.constant 0 : index
      %109 = vector.load %arg10[%c3_69, %c0_70, %c0_71] : memref<4x8x8xbf16, #tpu.memory_space<vmem>>, vector<1x8x8xbf16>
      %110 = vector.shape_cast %109 : vector<1x8x8xbf16> to vector<8x8xbf16>
      %111 = vector.shape_cast %108 : vector<8x8xbf16> to vector<1x8x8xbf16>
      tpu.vector_store %arg10[%c3_69, %c0_70, %c0_71], %111 {strides = array<i32>} : memref<4x8x8xbf16, #tpu.memory_space<vmem>>, vector<1x8x8xbf16>,
    } else {
    }
    %c0 = arith.constant 0 : index
    %c0_1 = arith.constant 0 : index
    %c0_2 = arith.constant 0 : index
    %3 = vector.load %arg8[%c0, %c0_1, %c0_2] : memref<4x8x8xbf16, #tpu.memory_space<vmem>>, vector<4x8x8xbf16>
    %cst = arith.constant 0xFF800000 : f32
    %4 = vector.broadcast %cst : f32 to vector<4x8x1xf32>
    %cst_3 = arith.constant 0.000000e+00 : f32
    %5 = vector.broadcast %cst_3 : f32 to vector<4x8x1xf32>
    %cst_4 = arith.constant 0.000000e+00 : f32
    %6 = vector.broadcast %cst_4 : f32 to vector<4x8x8xf32>
    %c0_i32_5 = arith.constant 0 : i32
    %c0_6 = arith.constant 0 : index
    %c0_7 = arith.constant 0 : index
    %c0_8 = arith.constant 0 : index
    %7 = vector.load %arg9[%c0_6, %c0_7, %c0_8] : memref<4x8x8xbf16, #tpu.memory_space<vmem>>, vector<4x8x8xbf16>
    %c0_9 = arith.constant 0 : index
    %c0_10 = arith.constant 0 : index
    %c0_11 = arith.constant 0 : index
    %8 = vector.load %arg10[%c0_9, %c0_10, %c0_11] : memref<4x8x8xbf16, #tpu.memory_space<vmem>>, vector<4x8x8xbf16>
    %cst_12 = arith.constant dense<0.000000e+00> : vector<4x8x8xf32>
    %9 = tpu.matmul %3, %7, %cst_12 {dimension_numbers = #tpu.dot_dimension_numbers<[2], [2], [1], [1], [0, 0, 0, 1, 1, 1], [0], [0]>} : vector<4x8x8xbf16>, vector<4x8x8xbf16>, vector<4x8x8xf32> -> vector<4x8x8xf32>
    %cst_13 = arith.constant dense<0xFF800000> : vector<4x8xf32>
    %10 = vector.multi_reduction <maximumf>, %9, %cst_13 [2] : vector<4x8x8xf32> to vector<4x8xf32>
    %11 = vector.shape_cast %10 : vector<4x8xf32> to vector<4x8x1xf32>
    %12 = arith.maximumf %4, %11 : vector<4x8x1xf32>
    %13 = arith.subf %4, %12 : vector<4x8x1xf32>
    %14 = math.exp %13 : vector<4x8x1xf32>
    %15 = vector.broadcast %12 : vector<4x8x1xf32> to vector<4x8x8xf32>
    %16 = arith.subf %9, %15 : vector<4x8x8xf32>
    %17 = math.exp %16 : vector<4x8x8xf32>
    %18 = arith.mulf %14, %5 : vector<4x8x1xf32>
    %cst_14 = arith.constant dense<0.000000e+00> : vector<4x8xf32>
    %19 = vector.multi_reduction <add>, %17, %cst_14 [2] : vector<4x8x8xf32> to vector<4x8xf32>
    %20 = vector.shape_cast %19 : vector<4x8xf32> to vector<4x8x1xf32>
    %21 = arith.addf %18, %20 : vector<4x8x1xf32>
    %22 = arith.truncf %17 : vector<4x8x8xf32> to vector<4x8x8xbf16>
    %cst_15 = arith.constant dense<0.000000e+00> : vector<4x8x8xf32>
    %23 = tpu.matmul %22, %8, %cst_15 {dimension_numbers = #tpu.dot_dimension_numbers<[2], [1], [1], [2], [0, 0, 0, 1, 1, 2], [0], [0]>} : vector<4x8x8xbf16>, vector<4x8x8xbf16>, vector<4x8x8xf32> -> vector<4x8x8xf32>
    %24 = vector.broadcast %14 : vector<4x8x1xf32> to vector<4x8x8xf32>
    %25 = arith.mulf %24, %6 : vector<4x8x8xf32>
    %26 = arith.addf %25, %23 : vector<4x8x8xf32>
    %27 = tpu.reciprocal %21 {approx = true} : vector<4x8x1xf32> -> vector<4x8x1xf32>
    %28 = vector.broadcast %27 : vector<4x8x1xf32> to vector<4x8x8xf32>
    %29 = arith.mulf %26, %28 : vector<4x8x8xf32>
    %30 = vector.extract_strided_slice %29 {offsets = [0, 0, 0], sizes = [1, 8, 8], strides = [1, 1, 1]} : vector<4x8x8xf32> to vector<1x8x8xf32>
    %31 = vector.shape_cast %30 : vector<1x8x8xf32> to vector<8x8xf32>
    %32 = arith.truncf %31 : vector<8x8xf32> to vector<8x8xbf16>
    %c0_16 = arith.constant 0 : index
    %c0_17 = arith.constant 0 : index
    %33 = vector.load %arg11[%c0_16, %c0_17] : memref<8x32xbf16, #tpu.memory_space<vmem>>, vector<8x8xbf16>
    tpu.vector_store %arg11[%c0_16, %c0_17], %32 {strides = array<i32>} : memref<8x32xbf16, #tpu.memory_space<vmem>>, vector<8x8xbf16>,
    %34 = vector.extract_strided_slice %29 {offsets = [1, 0, 0], sizes = [1, 8, 8], strides = [1, 1, 1]} : vector<4x8x8xf32> to vector<1x8x8xf32>
    %35 = vector.shape_cast %34 : vector<1x8x8xf32> to vector<8x8xf32>
    %36 = arith.truncf %35 : vector<8x8xf32> to vector<8x8xbf16>
    %c0_18 = arith.constant 0 : index
    %c8 = arith.constant 8 : index
    %37 = vector.load %arg11[%c0_18, %c8] : memref<8x32xbf16, #tpu.memory_space<vmem>>, vector<8x8xbf16>
    tpu.vector_store %arg11[%c0_18, %c8], %36 {strides = array<i32>} : memref<8x32xbf16, #tpu.memory_space<vmem>>, vector<8x8xbf16>,
    %38 = vector.extract_strided_slice %29 {offsets = [2, 0, 0], sizes = [1, 8, 8], strides = [1, 1, 1]} : vector<4x8x8xf32> to vector<1x8x8xf32>
    %39 = vector.shape_cast %38 : vector<1x8x8xf32> to vector<8x8xf32>
    %40 = arith.truncf %39 : vector<8x8xf32> to vector<8x8xbf16>
    %c0_19 = arith.constant 0 : index
    %c16 = arith.constant 16 : index
    %41 = vector.load %arg11[%c0_19, %c16] : memref<8x32xbf16, #tpu.memory_space<vmem>>, vector<8x8xbf16>
    tpu.vector_store %arg11[%c0_19, %c16], %40 {strides = array<i32>} : memref<8x32xbf16, #tpu.memory_space<vmem>>, vector<8x8xbf16>,
    %42 = vector.extract_strided_slice %29 {offsets = [3, 0, 0], sizes = [1, 8, 8], strides = [1, 1, 1]} : vector<4x8x8xf32> to vector<1x8x8xf32>
    %43 = vector.shape_cast %42 : vector<1x8x8xf32> to vector<8x8xf32>
    %44 = arith.truncf %43 : vector<8x8xf32> to vector<8x8xbf16>
    %c0_20 = arith.constant 0 : index
    %c24 = arith.constant 24 : index
    %45 = vector.load %arg11[%c0_20, %c24] : memref<8x32xbf16, #tpu.memory_space<vmem>>, vector<8x8xbf16>
    tpu.vector_store %arg11[%c0_20, %c24], %44 {strides = array<i32>} : memref<8x32xbf16, #tpu.memory_space<vmem>>, vector<8x8xbf16>,
    %c0_21 = arith.constant 0 : index
    %c0_22 = arith.constant 0 : index
    %46 = vector.load %arg11[%c0_21, %c0_22] : memref<8x32xbf16, #tpu.memory_space<vmem>>, vector<8x32xbf16>
    %c0_23 = arith.constant 0 : index
    %c0_24 = arith.constant 0 : index
    %47 = vector.load %arg5[%c0_23, %c0_24] : memref<32x32xbf16, #tpu.memory_space<vmem>>, vector<32x32xbf16>
    %cst_25 = arith.constant dense<0.000000e+00> : vector<8x32xf32>
    %48 = tpu.matmul %46, %47, %cst_25 {dimension_numbers = #tpu.dot_dimension_numbers<[1], [0], [0], [1], [0, 0, 1, 1], [], []>} : vector<8x32xbf16>, vector<32x32xbf16>, vector<8x32xf32> -> vector<8x32xf32>
    %c0_26 = arith.constant 0 : index
    %c0_27 = arith.constant 0 : index
    %49 = vector.load %arg6[%c0_26, %c0_27] : memref<1x32xf32, #tpu.memory_space<vmem>>, vector<1x32xf32>
    %50 = vector.broadcast %49 : vector<1x32xf32> to vector<8x32xf32>
    %51 = arith.addf %48, %50 : vector<8x32xf32>
    %c0_28 = arith.constant 0 : index
    %c0_29 = arith.constant 0 : index
    %c0_30 = arith.constant 0 : index
    %52 = vector.load %arg7[%c0_28, %c0_29, %c0_30] : memref<1x8x32xf32, #tpu.memory_space<vmem>>, vector<1x8x32xf32>
    %53 = vector.shape_cast %52 : vector<1x8x32xf32> to vector<8x32xf32>
    %54 = vector.shape_cast %51 : vector<8x32xf32> to vector<1x8x32xf32>
    tpu.vector_store %arg7[%c0_28, %c0_29, %c0_30], %54 {strides = array<i32>} : memref<1x8x32xf32, #tpu.memory_space<vmem>>, vector<1x8x32xf32>,
    return
  }
  func.func @transform_0(%arg0: i32, %arg1: i32) -> (i32, i32, i32) {
    %c0_i32 = arith.constant 0 : i32
    %c0_i32_0 = arith.constant 0 : i32
    %c0_i32_1 = arith.constant 0 : i32
    return %arg0, %c0_i32, %c0_i32_0 : i32, i32, i32
  }
  func.func @transform_1(%arg0: i32, %arg1: i32) -> (i32, i32) {
    %c0_i32 = arith.constant 0 : i32
    %c0_i32_0 = arith.constant 0 : i32
    %c0_i32_1 = arith.constant 0 : i32
    return %c0_i32, %c0_i32_0 : i32, i32
  }
  func.func @transform_2(%arg0: i32, %arg1: i32) -> (i32, i32) {
    %c0_i32 = arith.constant 0 : i32
    %c0_i32_0 = arith.constant 0 : i32
    %c0_i32_1 = arith.constant 0 : i32
    return %c0_i32, %c0_i32_0 : i32, i32
  }
  func.func @transform_3(%arg0: i32, %arg1: i32) -> (i32, i32) {
    %c0_i32 = arith.constant 0 : i32
    %c0_i32_0 = arith.constant 0 : i32
    %c0_i32_1 = arith.constant 0 : i32
    return %c0_i32, %c0_i32_0 : i32, i32
  }
  func.func @transform_4(%arg0: i32, %arg1: i32) -> (i32, i32) {
    %c0_i32 = arith.constant 0 : i32
    %c0_i32_0 = arith.constant 0 : i32
    %c0_i32_1 = arith.constant 0 : i32
    return %c0_i32, %c0_i32_0 : i32, i32
  }
  func.func @transform_5(%arg0: i32, %arg1: i32) -> (i32, i32, i32) {
    %c0_i32 = arith.constant 0 : i32
    %c0_i32_0 = arith.constant 0 : i32
    return %arg0, %arg1, %c0_i32 : i32, i32, i32
  }
}

</mosaic_0001>

<bundles_post_ra>
// kernel: tpu_custom_call.1
= control target key start
LH: loop header
LB: loop body
LE: loop exit
PB: predicated region body
PF: predicated region fallthrough
CT: control target
= control target key end

     0   :  { %s1838_s0 = inlined_call_operand.hbm [shape: f32[2,8,32], index: 0, kind: input, shape index: {}]   ;;  %s1839_s1 = inlined_call_operand.hbm [shape: bf16[32,96], index: 1, kind: input, shape index: {}]   ;;  %s1840_s2 = inlined_call_operand.vmem [shape: f32[1,96], index: 2, kind: input, shape index: {}]   ;;  %s1841_s3 = inlined_call_operand.hbm [shape: bf16[32,32], index: 3, kind: input, shape index: {}]   ;;  %s1842_s4 = inlined_call_operand.vmem [shape: f32[1,32], index: 4, kind: input, shape index: {}]   ;;  %s1843_s5 = inlined_call_operand.hbm [shape: f32[2,8,32], index: 5, kind: output, shape index: {}]  }
   0x1   :  { %1847 = sst [smem:[#allocation16_spill]] %s1839_s1 }
   0x2   :  { %10 = vsyncpa [#allocation7], 0 }
   0x3   :  { %12 = vsyncpa [#allocation7 + $0x1], 0 }
   0x4   :  { %13 = vsyncpa [#allocation10], 0 }
   0x5   :  { %14 = vsyncpa [#allocation8], 0 }
   0x6   :  { %16 = vsyncpa [#allocation8 + $0x1], 0  ;;  %s1556_s18 = smov 0   ;;  %s1558_s19 = smov 0  }
   0x7   :  { %s1560_s20 = smov 0   ;;  %s1562_s21 = smov 0  }
   0x8   :  { %s1564_s22 = smov 0   ;;  %s1566_s23 = smov 0  }
   0x9 LB: > { %s1082_s24 = sadd.s32 4294967295, %s1502_s23   ;;  %s1083_s25 = sadd.s32 4294967294, %s1502_s23   ;;  %s1502_s23 = sphi %s1566_s23, %s22_s23   ;;  %s1498_s22 = sphi %s1564_s22, %s1865_s22   ;;  %s1494_s21 = sphi %s1562_s21, %s1864_s21   ;;  %s1490_s20 = sphi %s1560_s20, %s1863_s20   ;;  %s1486_s19 = sphi %s1558_s19, %s1862_s19   ;;  %s1482_s18 = sphi %s1556_s18, %s1861_s18  }
   0xa   : > { %p54_p0 = scmp.ne.s32.totalorder %s1486_s19, %s1482_s18  ;;  %p1590_p1 = scmp.eq.s32.totalorder %s1082_s24, 0 }
   0xb   : > { %p1594_p2 = scmp.eq.s32.totalorder %s1082_s24, 1  ;;  %p170_p3 = scmp.eq.s32.totalorder %s1083_s25, 1 }
   0xc   : > { %s1848_s26 = scalar_select %p1590_p1, 1, 0 }
   0xd   : > { %p1600_p4 = por %p1590_p1, %p54_p0  ;;  %p1084_p5 = scmp.ge.s32.totalorder %s1502_s23, 1 }
   0xe   : > { %p1605_p6 = por %p170_p3, %p54_p0  ;;  %p177_p7 = scmp.lt.s32.totalorder %s1502_s23, 3 }
   0xf   : > { %s1850_s28 = scalar_select %p1600_p4, 1, 0 }
  0x10   : > { %s1851_s29 = scalar_select %p1605_p6, 1, 0 }
  0x11   : > { %p1610_p8 = pnand %p1084_p5, %p177_p7  ;;  %s1504_s6 = smov [#allocation9]  }
  0x12   : > { %s189_s7 = sshll.u32 %s1504_s6, 4  ;;  %s1505_s9 = smov [#allocation11]   ;;  %s190_s7 = int_to_ptr.vmem [resolvable:$true] %s189_s7 }
  0x13   : > { %p1221_p9 = pneg %p1610_p8  ;;  %s205_s10 = sshll.u32 %s1505_s9, 4  ;;  %s206_s10 = int_to_ptr.vmem [resolvable:$true] %s205_s10 }
  0x14   : > { %s1349_s11 = scalar_lea.vmem %s190_s7, 256  ;;  %p1357_p5 = scmp.lt.s32.totalorder %s190_s7, %s190_s7 }
  0x15   : > { %p1619_p11 = pnand %p1221_p9, %p1590_p1  ;;  %p1350_p13 = scmp.ne.s32.totalorder %s190_s7, %s1349_s11 }
  0x16   : > { %p1358_p7 = scmp.lt.s32.totalorder %s1349_s11, %s1349_s11 }
  0x17   : > { %p1340_p12 = pneg %p1619_p11 }
  0x18   : > { %p1359_p10 = por %p1358_p7, %p1357_p5 }
  0x19   : > { %p1352_p0 = pnand %p1350_p13, %p1340_p12 }
  0x1b   : > { %p1353_p3 = pneg %p1352_p0 }
  0x1d   : > { %p1360_p9 = pnand %p1359_p10, %p1353_p3 }
  0x1f   : > { %1363 = shalt.err (!%p1360_p9)
}
  0x20   : > { %s1506_s12 = smov 64   ;;  %s1507_s13 = smov 4  }
  0x21   : > { %s1854_s1 = sld [smem:[#allocation16_spill]]  ;;  %s1375_s16 = scalar_lea.vmem %s206_s10, 256 }
  0x22   : > { %p1376_p6 = scmp.ne.s32.totalorder %s206_s10, %s1375_s16  ;;  %p1383_p1 = scmp.lt.s32.totalorder %s206_s10, %s206_s10 }
  0x23   : > { %p1384_p4 = scmp.lt.s32.totalorder %s1375_s16, %s1375_s16 }
  0x24   : > { %p1378_p13 = pnand %p1376_p6, %p1340_p12 }
  0x25   : > { %p1385_p5 = por %p1384_p4, %p1383_p1 }
  0x26   : > { %p1379_p0 = pneg %p1378_p13 }
  0x27   : > { %1224 = dma.hbm_to_vmem [thread:$0]  (!%p1619_p11), %s1854_s1, 256, %s190_s7, [#allocation10], %s1506_s12, %s1506_s12, %s1507_s13  }
  0x28   : > { %p1386_p10 = pnand %p1385_p5, %p1379_p0 }
  0x2a   : > { %1389 = shalt.err (!%p1386_p10)
}
  0x2b   : > { %1227 = dma.hbm_to_vmem [thread:$0]  (!%p1619_p11), %s1841_s3, 256, %s206_s10, [#allocation10], %s1506_s12, %s1506_s12, %s1507_s13  }
  0x2c   : > { %s34_s25 = sadd.s32 1, %s1498_s22  ;;  %s41_s6 = sadd.s32 1, %s1490_s20 }
  0x2d   : > { %p36_p1 = scmp.ge.s32.totalorder %s34_s25, 2  ;;  %p48_p4 = scmp.ne.s32.totalorder %s1490_s20, %s1486_s19 }
  0x2e   : > { %p49_p6 = scmp.eq.s32.totalorder %s1502_s23, 0  ;;  %p1238_p12 = scmp.lt.s32.totalorder %s1502_s23, 2 }
  0x2f   : > { %s1867_s25 = smov (%p36_p1, %s34_s25), 0  ;;  %p1651_p7 = por %p1594_p2, %p48_p4 }
  0x30   : > { %p50_p3 = por %p49_p6, %p48_p4  ;;  %s38_s8 = ssub.s32 %s1498_s22, %s1867_s25 }
  0x31   : > { %s222_s9 = sand.u32 1, %s1490_s20   ;;  %p39_p9 = scmp.eq.s32.totalorder %s38_s8, 0 }
  0x32   : > { %s1088_s10 = sshll.u32 %s222_s9, 3  ;;  %s1089_s11 = sshll.u32 %s1498_s22, 7 }
  0x33   : > { %s1660_s12 = scalar_select %p39_p9, %s1490_s20, %s41_s6  }
  0x34   : > { %s231_s15 = scalar_lea.hbm %s1838_s0, %s1089_s11  ;;  %s226_s16 = scalar_lea.vmem [#allocation6], %s1088_s10 }
  0x35   : > { %s233_s17 = sshll.u32 %s226_s16, 4  ;;  %p1667_p11 = pnand %p1238_p12, %p50_p3  ;;  %s234_s17 = int_to_ptr.vmem [resolvable:$true] %s233_s17 }
  0x36   : > { %s223_s24 = scalar_lea.sflag [#allocation7], %s222_s9  ;;  %s1403_s8 = scalar_lea.vmem %s234_s17, 128 }
  0x37   : > { %p1392_p2 = pneg %p1667_p11  ;;  %p1404_p13 = scmp.ne.s32.totalorder %s234_s17, %s1403_s8 }
  0x38   : > { %s1508_s6 = smov [#allocation6]  }
  0x39   : > { %p1406_p0 = pnand %p1404_p13, %p1392_p2  ;;  %s1408_s1 = sshll.u32 %s1508_s6, 4  ;;  %s1409_s1 = int_to_ptr.vmem [resolvable:$false] %s1408_s1 }
  0x3a   : > { %s1410_s11 = scalar_lea.vmem %s1409_s1, 256  ;;  %p1411_p10 = scmp.lt.s32.totalorder %s234_s17, %s1409_s1 }
  0x3b   : > { %p1407_p5 = pneg %p1406_p0  ;;  %p1412_p1 = scmp.lt.s32.totalorder %s1410_s11, %s1403_s8 }
  0x3d   : > { %p1413_p4 = por %p1412_p1, %p1411_p10 }
  0x3f   : > { %p1414_p6 = pnand %p1413_p4, %p1407_p5 }
  0x41   : > { %1417 = shalt.err (!%p1414_p6)
}
  0x42   : > { %1231 = dma.hbm_to_vmem [thread:$0]  (!%p1667_p11), %s231_s15, 128, %s234_s17, %s223_s24  }
  0x43   : > { %242 = sbr.rel (%p1610_p8) target bundleno = 1309 (0x51d), region = 40  ;;  %s1678_s9 = sand.u32 (!%p1610_p8), 1, %s1486_s19  }
  0x44   : > { %s1091_s10 = sshll.u32 (!%p1610_p8), %s1678_s9, 3  ;;  %s245_s13 = scalar_lea.sflag (!%p1610_p8), [#allocation7], %s1678_s9 }
  0x45   : > { %s248_s1 = scalar_lea.vmem (!%p1610_p8), [#allocation6], %s1091_s10  ;;  %p1857_p12 = scmp.ne.s32.totalorder (!%p1610_p8), %s1850_s28, 0 }
  0x48   : > { %1469 = dma.done.wait (%p1857_p12), %s245_s13, 128  }
  0x49   : > { %1471 = vsyncadd (%p1857_p12), %s245_s13, 4294967168  ;;  %p1858_p3 = scmp.ne.s32.totalorder %s1848_s26, 0 }
  0x4b   : > { %1473 = dma.done.wait (%p1858_p3), [#allocation10], 512  }
  0x4c   : > { %1475 = vsyncadd (%p1858_p3), [#allocation10], 4294966784  ;;  %v1509_v0 = vmov 0.0   ;;  %vm1510_vm0 = vmmov 0   ;;  %v1310_v1 = vld [vmem:[#allocation9 + $0x8] sm:$0xff]   ;;  %v1311_v2 = vld [vmem:[#allocation9] sm:$0xff]  }
  0x4d   : > { %1145 = vmatprep.subr.bf16.mxu0 %v1509_v0  ;;  %1149 = vmatprep.mubr.msk.bf16.mxu0 %vm1510_vm0, %v1509_v0  ;;  %v288_v3 = vld [vmem:[%s248_s1] sm:$0xff]  ;;  %vm313_vm1 = vcmask 261120   ;;  %vm358_vm2 = vcmask 60416   ;;  %s1511_s30 = smov 80   ;;  %s1512_s14 = smov 96   ;;  %vm428_vm3 = vcmask 64512  }
  0x4e   : > { %1153 = vmatprep.subr.bf16.mxu1 %v1509_v0  ;;  %1155 = vmatprep.mubr.msk.bf16.mxu1 %vm1510_vm0, %v1509_v0  ;;  %v289_v4 = vpack.c.bf16 %v288_v3, %v288_v3  ;;  %v1095_v5 = vld [vmem:[%s1840_s2] ss:$0 sm:$0xff]  ;;  %s1513_s15 = smov 120   ;;  %s1514_s16 = smov 88   ;;  %vm676_vm4 = vcmask 1043456   ;;  %vm880_vm5 = vcmask 126016  }
  0x4f   : > { %1146 = vmatpush3.bf16.msra.mxu0 %v1310_v1  ;;  %s1515_s17 = smov 112   ;;  %s1516_s27 = smov 72   ;;  %vm889_vm6 = vcmask 191616   ;;  %vm898_vm7 = vcmask 257216  }
  0x50   : > { %1147 = vmatprep.subr.bf16.mxu0 %v1509_v0  ;;  %s1517_s24 = smov 56   ;;  %s1518_s8 = smov 104  }
  0x51   : > { %s1519_s6 = smov 64   ;;  %s1520_s11 = smov 48  }
  0x52   : > { %s1521_s13 = smov 40   ;;  %s1522_s1 = smov 8  }
  0x53   : > { %1148 = vmatpush3.bf16.msra.mxu0 %v1311_v2  ;;  %s1523_s26 = smov 16   ;;  %s1524_s28 = smov 24  }
  0x54   : > { %1159 = vmatprep.subr.bf16.mxu0 %v1509_v0 }
  0x56   : > { %1150 = vmatmul.mubr.msk.bf16.vlgmr.msra.gmra.mxu0 %vm313_vm1, %v289_v4 }
  0x57   : > { %1161 = vmatprep.mubr.msk.bf16.mxu0 %vm1510_vm0, %v1509_v0 }
 0x116   : > { %v351_v6 = vpop.f32.mrf.mxu0 }
 0x117   : > { %v352_v7 = vadd.f32 %v1095_v5, %v351_v6 }
 0x118   : > { %v1151_v8 = vpop.f32.mrf.mxu0 }
 0x119   : > { %v1706_v9 = vpack.c.bf16 %v352_v7, %v352_v7 }
 0x11a   : > { %v354_v10 = vpop.f32.mrf.mxu0 }
 0x11b   : > { %391 = vrot.lane.b32.xlu1 %v1706_v9, %s1511_s30  ;;  %363 = vrot.lane.b32.xlu0 %v1706_v9, %s1512_s14  ;;  %359 = vst.msk [vmem:[#allocation2] sm:$0xf] %vm358_vm2, %v1706_v9 }
 0x11c   : > { %v1152_v11 = vpop.f32.mrf.mxu0 }
 0x11f   : > { %371 = vrot.lane.b32.xlu1 %v1706_v9, %s1513_s15  ;;  %376 = vrot.lane.b32.xlu0 %v1706_v9, %s1514_s16  ;;  %s1116_s15 = sshll.u32 %s1494_s21, 7  ;;  %s282_s16 = scalar_lea.vmem [#allocation12], %s1091_s10 }
 0x120   : > { %s970_s21 = scalar_lea.sflag [#allocation8], %s1678_s9  ;;  %s1525_s10 = smov [#allocation12]  }
 0x122   : > { %v416_v26 = vld [vmem:[#allocation2] sm:$0xf] }
 0x123   : > { %386 = vrot.lane.b32.xlu1 %v1706_v9, %s1515_s17  ;;  %406 = vrot.lane.b32.xlu0 %v1706_v9, %s1516_s27  ;;  %s984_s17 = sshll.u32 %s282_s16, 4  ;;  %s1791_s17 = int_to_ptr.vmem [resolvable:$true] %s984_s17 }
 0x127   : > { %381 = vrot.lane.b32.xlu1 %v1706_v9, %s1517_s24  ;;  %401 = vrot.lane.b32.xlu0 %v1706_v9, %s1518_s8  ;;  %s1789_s8 = scalar_lea.hbm %s1843_s5, %s1116_s15 }
 0x12b   : > { %367 = vrot.lane.b32.xlu0 %v1706_v9, %s1519_s6  ;;  %s1418_s6 = scalar_lea.vmem %s1791_s17, 128 }
 0x12c   : > { %p1419_p8 = scmp.ne.s32.totalorder %s1791_s17, %s1418_s6 }
 0x12e   : > { %p1420_p9 = pnand %p1419_p8, %p1651_p7 }
 0x130   : > { %p1421_p11 = pneg %p1420_p9 }
 0x18d   : > { %v392_v12 = vpop.permute.xlu1 %391  ;;  %v364_v13 = vpop.permute.xlu0 %363 }
 0x18e   : > { %395 = vst.msk [vmem:[#allocation3 + $0x8] sm:$0xf] %vm358_vm2, %v392_v12  ;;  %366 = vst.msk [vmem:[#allocation3] sm:$0xf] %vm358_vm2, %v364_v13 }
 0x191   : > { %v372_v14 = vpop.permute.xlu1 %371  ;;  %v377_v15 = vpop.permute.xlu0 %376 }
 0x192   : > { %375 = vst.msk [vmem:[#allocation2 + $0x4] sm:$0xf] %vm358_vm2, %v372_v14  ;;  %380 = vst.msk [vmem:[#allocation3 + $0x4] sm:$0xf] %vm358_vm2, %v377_v15 }
 0x195   : > { %v387_v16 = vpop.permute.xlu1 %386  ;;  %v407_v17 = vpop.permute.xlu0 %406  ;;  %v420_v18 = vld [vmem:[#allocation3] sm:$0xf]  ;;  %v422_v24 = vld [vmem:[#allocation3 + $0x8] sm:$0xf] }
 0x196   : > { %390 = vst.msk [vmem:[#allocation2 + $0x8] sm:$0xf] %vm358_vm2, %v387_v16  ;;  %410 = vst.msk [vmem:[#allocation3 + $0xc] sm:$0xf] %vm358_vm2, %v407_v17  ;;  %v433_v19 = vsel %vm428_vm3, %v420_v18, 0  ;;  %v525_v27 = vsel %vm428_vm3, %v422_v24, 0 }
 0x197   : > { %1154 = vmatpush3.bf16.xpose.msra.mxu1 %v433_v19 }
 0x198   : > { %1165 = vmatprep.subr.bf16.mxu1 %v1509_v0 }
 0x199   : > { %v382_v20 = vpop.permute.xlu1 %381  ;;  %v402_v21 = vpop.permute.xlu0 %401  ;;  %v421_v22 = vld [vmem:[#allocation3 + $0x4] sm:$0xf]  ;;  %v417_v29 = vld [vmem:[#allocation2 + $0x4] sm:$0xf] }
 0x19a   : > { %385 = vst.msk [vmem:[#allocation4 + $0x4] sm:$0xf] %vm358_vm2, %v382_v20  ;;  %405 = vst.msk [vmem:[#allocation2 + $0xc] sm:$0xf] %vm358_vm2, %v402_v21  ;;  %v479_v23 = vsel %vm428_vm3, %v421_v22, 0 }
 0x19b   : > { %1160 = vmatpush3.bf16.xpose.msra.mxu0 %v479_v23 }
 0x19c   : > { %1171 = vmatprep.subr.bf16.mxu0 %v1509_v0 }
 0x19d   : > { %v368_v25 = vpop.permute.xlu0 %367  ;;  %v423_v28 = vld [vmem:[#allocation3 + $0xc] sm:$0xf]  ;;  %v418_v31 = vld [vmem:[#allocation2 + $0x8] sm:$0xf] }
 0x19e   : > { %370 = vst.msk [vmem:[#allocation4] sm:$0xf] %vm358_vm2, %v368_v25  ;;  %1156 = vmatmul.mubr.msk.bf16.vlgmr.msra.gmra.mxu1 %vm428_vm3, %v416_v26  ;;  %v571_v30 = vsel %vm428_vm3, %v423_v28, 0 }
 0x19f   : > { %1166 = vmatpush3.bf16.xpose.msra.mxu1 %v525_v27  ;;  %1167 = vmatprep.mubr.msk.bf16.mxu1 %vm1510_vm0, %v1509_v0 }
 0x1a0   : > { %1177 = vmatprep.subr.bf16.mxu1 %v1509_v0 }
 0x1a1   : > { %v425_v34 = vld [vmem:[#allocation4 + $0x4] sm:$0xf]  ;;  %v419_v35 = vld [vmem:[#allocation2 + $0xc] sm:$0xf] }
 0x1a2   : > { %1162 = vmatmul.mubr.msk.bf16.vlgmr.msra.gmra.mxu0 %vm428_vm3, %v417_v29  ;;  %v724_v36 = vsel %vm676_vm4, %v425_v34, 0 }
 0x1a3   : > { %1172 = vmatpush3.bf16.xpose.msra.mxu0 %v571_v30  ;;  %1173 = vmatprep.mubr.msk.bf16.mxu0 %vm1510_vm0, %v1509_v0 }
 0x1a4   : > { %1183 = vmatprep.subr.bf16.mxu0 %v1509_v0 }
 0x1a5   : > { %v424_v32 = vld [vmem:[#allocation4] sm:$0xf] }
 0x1a6   : > { %1168 = vmatmul.mubr.msk.bf16.vlgmr.msra.gmra.mxu1 %vm428_vm3, %v418_v31  ;;  %v678_v33 = vsel %vm676_vm4, %v424_v32, 0 }
 0x1a7   : > { %1178 = vmatpush3.bf16.msra.mxu1 %v678_v33  ;;  %1179 = vmatprep.mubr.msk.bf16.mxu1 %vm1510_vm0, %v1509_v0 }
 0x1a8   : > { %1189 = vmatprep.subr.bf16.mxu1 %v1509_v0 }
 0x1aa   : > { %1174 = vmatmul.mubr.msk.bf16.vlgmr.msra.gmra.mxu0 %vm428_vm3, %v419_v35 }
 0x1ab   : > { %1184 = vmatpush3.bf16.msra.mxu0 %v724_v36  ;;  %1185 = vmatprep.mubr.msk.bf16.mxu0 %vm1510_vm0, %v1509_v0 }
 0x1ac   : > { %1195 = vmatprep.subr.bf16.mxu0 %v1509_v0 }
 0x25e   : > { %v469_v37 = vpop.f32.mrf.mxu1 }
 0x25f   : > { %v613_v38 = vsel %vm428_vm3, %v469_v37, -inf }
 0x260   : > { %614 = vmax.xlane.f32.xlu1 %v613_v38  ;;  %v1157_v39 = vpop.f32.mrf.mxu1 }
 0x262   : > { %v472_v40 = vpop.f32.mrf.mxu1  ;;  %v515_v41 = vpop.f32.mrf.mxu0 }
 0x263   : > { %v616_v42 = vsel %vm428_vm3, %v515_v41, -inf }
 0x264   : > { %v1158_v43 = vpop.f32.mrf.mxu1  ;;  %617 = vmax.xlane.f32.xlu0 %v616_v42  ;;  %v1163_v44 = vpop.f32.mrf.mxu0 }
 0x266   : > { %v518_v45 = vpop.f32.mrf.mxu0  ;;  %v561_v46 = vpop.f32.mrf.mxu1 }
 0x267   : > { %v619_v47 = vsel %vm428_vm3, %v561_v46, -inf }
 0x268   : > { %v1169_v48 = vpop.f32.mrf.mxu1  ;;  %620 = vmax.xlane.f32.xlu0 %v619_v47  ;;  %v1164_v49 = vpop.f32.mrf.mxu0 }
 0x26a   : > { %v564_v50 = vpop.f32.mrf.mxu1  ;;  %v607_v51 = vpop.f32.mrf.mxu0 }
 0x26b   : > { %v622_v52 = vsel %vm428_vm3, %v607_v51, -inf }
 0x26c   : > { %v1170_v53 = vpop.f32.mrf.mxu1  ;;  %623 = vmax.xlane.f32.xlu1 %v622_v52  ;;  %v1175_v54 = vpop.f32.mrf.mxu0 }
 0x26e   : > { %v610_v55 = vpop.f32.mrf.mxu0 }
 0x270   : > { %v1176_v56 = vpop.f32.mrf.mxu0 }
 0x27d   : > { %396 = vrot.lane.b32.xlu1 %v1706_v9, %s1520_s11  ;;  %s1422_s11 = sshll.u32 %s1525_s10, 4  ;;  %s1423_s11 = int_to_ptr.vmem [resolvable:$false] %s1422_s11 }
 0x27e   : > { %411 = vrot.lane.b32.xlu0 %v1706_v9, %s1521_s13  ;;  %s1424_s13 = scalar_lea.vmem %s1423_s11, 256  ;;  %p1425_p2 = scmp.lt.s32.totalorder %s1791_s17, %s1423_s11 }
 0x27f   : > { %p1426_p13 = scmp.lt.s32.totalorder %s1424_s13, %s1418_s6 }
 0x281   : > { %p1427_p0 = por %p1426_p13, %p1425_p2 }
 0x283   : > { %p1428_p5 = pnand %p1427_p0, %p1421_p11 }
 0x2e9   : > { %v615_v57 = vpop.xlane.xlu1 %614 }
 0x2ea   : > { %v637_v58 = vsub.f32 %v469_v37, %v615_v57  ;;  %v625_v24 = vsub.f32 -inf, %v615_v57 }
 0x2ec   : > { %v641_v59 = vmul.f32 1.442695, %v637_v58  ;;  %v629_v25 = vmul.f32 1.442695, %v625_v24 }
 0x2ed   : > { %v618_v60 = vpop.xlane.xlu0 %617 }
 0x2ee   : > { %v638_v61 = vsub.f32 %v515_v41, %v618_v60  ;;  %1314 = vpow2.f32 %v641_v59  ;;  %v626_v26 = vsub.f32 -inf, %v618_v60  ;;  %v1312_v60 = vld [vmem:[#allocation11 + $0x8] sm:$0xff]  }
 0x2f0   : > { %v643_v62 = vmul.f32 1.442695, %v638_v61  ;;  %v631_v27 = vmul.f32 1.442695, %v626_v26 }
 0x2f1   : > { %v621_v63 = vpop.xlane.xlu0 %620 }
 0x2f2   : > { %v639_v1 = vsub.f32 %v561_v46, %v621_v63  ;;  %1316 = vpow2.f32 %v643_v62  ;;  %v627_v28 = vsub.f32 -inf, %v621_v63 }
 0x2f4   : > { %v645_v2 = vmul.f32 1.442695, %v639_v1  ;;  %v633_v29 = vmul.f32 1.442695, %v627_v28  ;;  %v1313_v1 = vld [vmem:[#allocation11] sm:$0xff]  }
 0x2f5   : > { %v412_v3 = vpop.permute.xlu0 %411  ;;  %v624_v4 = vpop.xlane.xlu1 %623 }
 0x2f6   : > { %415 = vst.msk [vmem:[#allocation4 + $0xc] sm:$0xf] %vm358_vm2, %v412_v3  ;;  %v640_v5 = vsub.f32 %v607_v51, %v624_v4  ;;  %1318 = vpow2.f32 %v645_v2  ;;  %v628_v30 = vsub.f32 -inf, %v624_v4 }
 0x2f8   : > { %v647_v6 = vmul.f32 1.442695, %v640_v5  ;;  %v635_v31 = vmul.f32 1.442695, %v628_v30 }
 0x2f9   : > { %v397_v7 = vpop.permute.xlu1 %396 }
 0x2fa   : > { %400 = vst.msk [vmem:[#allocation4 + $0x8] sm:$0xf] %vm358_vm2, %v397_v7  ;;  %1320 = vpow2.f32 %v647_v6 }
 0x2fb   : > { %v1315_v8 = vpop.eup %1314  ;;  %1322 = vpow2.f32 %v629_v25 }
 0x2fc   : > { %v669_v9 = vpack.c.bf16 %v1315_v8, %v1315_v8  ;;  %v653_v19 = vsel %vm428_vm3, %v1315_v8, 0.0  ;;  %1324 = vpow2.f32 %v631_v27 }
 0x2fd   : > { %v427_v11 = vld [vmem:[#allocation4 + $0xc] sm:$0xf]  ;;  %1326 = vpow2.f32 %v633_v29 }
 0x2fe   : > { %1180 = vmatmul.mubr.msk.bf16.vlgmr.msra.gmra.mxu1 %vm428_vm3, %v669_v9  ;;  %v816_v16 = vsel %vm676_vm4, %v427_v11, 0  ;;  %1328 = vpow2.f32 %v635_v31 }
 0x2ff   : > { %v1317_v10 = vpop.eup %1316  ;;  %1191 = vmatprep.mubr.msk.bf16.mxu1 %vm1510_vm0, %v1509_v0 }
 0x300   : > { %v656_v12 = vsel %vm428_vm3, %v1317_v10, 0.0  ;;  %v670_v13 = vpack.c.bf16 %v1317_v10, %v1317_v10 }
 0x301   : > { %v426_v14 = vld [vmem:[#allocation4 + $0x8] sm:$0xf]  ;;  %657 = vadd.xlane.f32.xlu1 %v656_v12 }
 0x302   : > { %v770_v15 = vsel %vm676_vm4, %v426_v14, 0  ;;  %1186 = vmatmul.mubr.msk.bf16.vlgmr.msra.gmra.mxu0 %vm428_vm3, %v670_v13 }
 0x303   : > { %1190 = vmatpush3.bf16.msra.mxu1 %v770_v15  ;;  %v1319_v17 = vpop.eup %1318  ;;  %1196 = vmatpush3.bf16.msra.mxu0 %v816_v16 }
 0x304   : > { %1197 = vmatprep.mubr.msk.bf16.mxu0 %vm1510_vm0, %v1509_v0  ;;  %v659_v18 = vsel %vm428_vm3, %v1319_v17, 0.0  ;;  %v671_v20 = vpack.c.bf16 %v1319_v17, %v1319_v17  ;;  %1201 = vmatprep.subr.bf16.mxu1 %v1509_v0 }
 0x305   : > { %660 = vadd.xlane.f32.xlu0 %v659_v18  ;;  %654 = vadd.xlane.f32.xlu1 %v653_v19 }
 0x306   : > { %1192 = vmatmul.mubr.msk.bf16.vlgmr.msra.gmra.mxu1 %vm428_vm3, %v671_v20 }
 0x307   : > { %v1321_v21 = vpop.eup %1320  ;;  %1205 = vmatprep.mubr.msk.bf16.mxu1 %vm1510_vm0, %v1509_v0  ;;  %1202 = vmatpush3.bf16.msra.mxu1 %v1312_v60 }
 0x308   : > { %v662_v22 = vsel %vm428_vm3, %v1321_v21, 0.0  ;;  %v672_v23 = vpack.c.bf16 %v1321_v21, %v1321_v21  ;;  %v1323_v33 = vpop.eup %1322  ;;  %1203 = vmatprep.subr.bf16.mxu1 %v1509_v0 }
 0x309   : > { %663 = vadd.xlane.f32.xlu0 %v662_v22  ;;  %v649_v35 = vmul.f32 0.0, %v1323_v33  ;;  %v1325_v36 = vpop.eup %1324  ;;  %v1111_v22 = vld [vmem:[%s1842_s4] ss:$0 sm:$0xff] }
 0x30a   : > { %1198 = vmatmul.mubr.msk.bf16.vlgmr.msra.gmra.mxu0 %vm428_vm3, %v672_v23  ;;  %v650_v38 = vmul.f32 0.0, %v1325_v36  ;;  %v1327_v39 = vpop.eup %1326 }
 0x30b   : > { %v651_v42 = vmul.f32 0.0, %v1327_v39  ;;  %v1329_v43 = vpop.eup %1328  ;;  %1204 = vmatpush3.bf16.msra.mxu1 %v1313_v1 }
 0x30c   : > { %v652_v46 = vmul.f32 0.0, %v1329_v43 }
 0x38a   : > { %v658_v32 = vpop.xlane.xlu1 %657 }
 0x38b   : > { %v666_v41 = vadd.f32 %v658_v32, %v650_v38 }
 0x38e   : > { %v655_v34 = vpop.xlane.xlu1 %654  ;;  %v661_v40 = vpop.xlane.xlu0 %660 }
 0x38f   : > { %v665_v37 = vadd.f32 %v655_v34, %v649_v35  ;;  %v667_v44 = vadd.f32 %v661_v40, %v651_v42 }
 0x391   : > { %1330 = vrcp.f32 %v665_v37 }
 0x392   : > { %1332 = vrcp.f32 %v666_v41  ;;  %v664_v45 = vpop.xlane.xlu0 %663 }
 0x393   : > { %1334 = vrcp.f32 %v667_v44  ;;  %v668_v47 = vadd.f32 %v664_v45, %v652_v46 }
 0x395   : > { %1336 = vrcp.f32 %v668_v47 }
 0x39e   : > { %v1331_v50 = vpop.eup %1330 }
 0x39f   : > { %v1333_v57 = vpop.eup %1332 }
 0x3a0   : > { %v1335_v4 = vpop.eup %1334 }
 0x3a2   : > { %v1337_v12 = vpop.eup %1336 }
 0x3be   : > { %v714_v48 = vpop.f32.mrf.mxu1 }
 0x3bf   : > { %v858_v49 = vadd.f32 %v714_v48, %v649_v35 }
 0x3c0   : > { %v1181_v51 = vpop.f32.mrf.mxu1 }
 0x3c1   : > { %v866_v52 = vmul.f32 %v1331_v50, %v858_v49 }
 0x3c2   : > { %v717_v53 = vpop.f32.mrf.mxu1  ;;  %v760_v54 = vpop.f32.mrf.mxu0 }
 0x3c3   : > { %v870_v55 = vpack.c.bf16 %v866_v52, %v866_v52  ;;  %v859_v56 = vadd.f32 %v760_v54, %v650_v38 }
 0x3c4   : > { %v1182_v58 = vpop.f32.mrf.mxu1  ;;  %v1187_v59 = vpop.f32.mrf.mxu0 }
 0x3c5   : > { %872 = vst.msk [vmem:[#allocation5] sm:$0xf] %vm358_vm2, %v870_v55  ;;  %v867_v61 = vmul.f32 %v1333_v57, %v859_v56 }
 0x3c6   : > { %v763_v62 = vpop.f32.mrf.mxu0  ;;  %v806_v63 = vpop.f32.mrf.mxu1 }
 0x3c7   : > { %v1120_v2 = vpack.c.bf16 %v867_v61, %v867_v61  ;;  %v860_v3 = vadd.f32 %v806_v63, %v651_v42 }
 0x3c8   : > { %v1188_v5 = vpop.f32.mrf.mxu0  ;;  %v1193_v6 = vpop.f32.mrf.mxu1 }
 0x3c9   : > { %v868_v7 = vmul.f32 %v1335_v4, %v860_v3  ;;  %877 = vrot.lane.b32.xlu0 %v1120_v2, %s1522_s1 }
 0x3ca   : > { %v809_v8 = vpop.f32.mrf.mxu1  ;;  %v852_v9 = vpop.f32.mrf.mxu0 }
 0x3cb   : > { %v1121_v10 = vpack.c.bf16 %v868_v7, %v868_v7  ;;  %v861_v11 = vadd.f32 %v852_v9, %v652_v46 }
 0x3cc   : > { %v1194_v13 = vpop.f32.mrf.mxu1  ;;  %v1199_v14 = vpop.f32.mrf.mxu0 }
 0x3cd   : > { %v869_v15 = vmul.f32 %v1337_v12, %v861_v11  ;;  %886 = vrot.lane.b32.xlu1 %v1121_v10, %s1523_s26 }
 0x3ce   : > { %v855_v16 = vpop.f32.mrf.mxu0 }
 0x3cf   : > { %v1122_v17 = vpack.c.bf16 %v869_v15, %v869_v15 }
 0x3d0   : > { %v1200_v0 = vpop.f32.mrf.mxu0 }
 0x3d1   : > { %895 = vrot.lane.b32.xlu1 %v1122_v17, %s1524_s28 }
 0x43b   : > { %v878_v18 = vpop.permute.xlu0 %877 }
 0x43c   : > { %881 = vst.msk [vmem:[#allocation5] sm:$0xf] %vm880_vm5, %v878_v18 }
 0x43f   : > { %v887_v19 = vpop.permute.xlu1 %886 }
 0x440   : > { %890 = vst.msk [vmem:[#allocation5] sm:$0xf] %vm889_vm6, %v887_v19 }
 0x443   : > { %v896_v20 = vpop.permute.xlu1 %895 }
 0x444   : > { %899 = vst.msk [vmem:[#allocation5] sm:$0xf] %vm898_vm7, %v896_v20 }
 0x44b   : > { %v900_v21 = vld [vmem:[#allocation5] sm:$0xf] }
 0x44c   : > { %1206 = vmatmul.mubr.msk.bf16.vlgmr.msra.gmra.mxu1 %vm313_vm1, %v900_v21 }
 0x50c   : > { %v962_v23 = vpop.f32.mrf.mxu1 }
 0x50d   : > { %v963_v24 = vadd.f32 %v1111_v22, %v962_v23 }
 0x50e   : > { %v1207_v25 = vpop.f32.mrf.mxu1 }
 0x50f   : > { %968 = vst.msk [vmem:[%s282_s16] sm:$0xff] %vm313_vm1, %v963_v24 }
 0x510   : > { %v965_v26 = vpop.f32.mrf.mxu1 }
 0x511   : > { %1431 = shalt.err (!%p1428_p5)
}
 0x512   : > { %s1432_s1 = scalar_lea.hbm %s1789_s8, 128  ;;  %s1436_s28 = scalar_lea.hbm %s1843_s5, 256 }
 0x513   : > { %p1433_p10 = scmp.ne.s32.totalorder %s1789_s8, %s1432_s1  ;;  %p1437_p6 = scmp.lt.s32.totalorder %s1789_s8, %s1843_s5 }
 0x514   : > { %p1438_p12 = scmp.lt.s32.totalorder %s1436_s28, %s1432_s1 }
 0x515   : > { %p1434_p1 = pnand %p1433_p10, %p1651_p7 }
 0x516   : > { %p1439_p3 = por %p1438_p12, %p1437_p6 }
 0x517   : > { %p1435_p4 = pneg %p1434_p1 }
 0x519   : > { %p1440_p8 = pnand %p1439_p3, %p1435_p4 }
 0x51b   : > { %1443 = shalt.err (!%p1440_p8)
}
 0x51c   : > { %1219 = dma.vmem_to_hbm [thread:$0]  (%p1651_p7), %s1791_s17, 128, %s1789_s8, %s970_s21   ;;  %v1208_v27 = vpop.f32.mrf.mxu1 }
 0x51d PF: > { %s996_s15 = sand.u32 1, %s1482_s18   ;;  %p1859_p9 = scmp.ne.s32.totalorder %s1851_s29, 0 }
 0x51e   : > { %p1860_p11 = scmp.ge.s32.totalorder %s1502_s23, 2  ;;  %s997_s16 = scalar_lea.sflag [#allocation8], %s996_s15 }
 0x520   : > { %p1233_p2 = pnand %p1860_p11, %p1859_p9 }
 0x522   : > { %p1234_p13 = pneg %p1233_p2 }
 0x524   : > { %1477 = dma.done.wait (%p1234_p13), %s997_s16, 128  }
 0x525   : > { %1479 = vsyncadd (%p1234_p13), %s997_s16, 4294967168  ;;  %s22_s23 = sadd.s32 1, %s1502_s23   ;;  %s1861_s18 = smov %s1486_s19 }
 0x526   : > { %p19_p0 = scmp.ge.s32.totalorder %s22_s23, 4   ;;  %s1862_s19 = smov %s1490_s20 }
 0x527   : > { %s1863_s20 = smov %s1660_s12  ;;  %s1864_s21 = smov %s1498_s22 }
 0x528   : > { %s1865_s22 = smov %s1867_s25  ;;  %21 = sbr.rel (!%p19_p0) target bundleno = 9 (0x9), region = 106 }
 0x52d   :  { %1002 = vsyncpa [#allocation7], 1 }
 0x52e   :  { %1004 = vsyncpa [#allocation7 + $0x1], 1 }
 0x52f   :  { %1005 = vsyncpa [#allocation10], 1 }
 0x530   :  { %1006 = vsyncpa [#allocation8], 1 }
 0x531   :  { %1008 = vsyncpa [#allocation8 + $0x1], 1 }

</bundles_post_ra>
